<compile_context>
chip_gen: v7x
topology: tpu7x:2x2x1
jax: 0.10.0
libtpu: 0.0.40
codegen_flags: <defaults>
</compile_context>

<pallas_src>
import jax
import jax.numpy as jnp
from jax.experimental import pallas as pl
from jax.experimental.pallas import tpu as pltpu

# Model hyper-parameters (small, consistent with the tutorial module).
D_MODEL = 32
N_HEADS = 4
D_K = 8
D_V = 8
D_FF = 64
LN_EPS = 1e-5  # PyTorch nn.LayerNorm default


def _layer_norm(x, gamma, beta):
    mean = jnp.mean(x, axis=-1, keepdims=True)
    var = jnp.mean((x - mean) ** 2, axis=-1, keepdims=True)
    return (x - mean) * jax.lax.rsqrt(var + LN_EPS) * gamma + beta


def encoder_layer_kernel(x_ref, amask_ref,
                         wqkv_ref, bqkv_ref, wo_ref, bo_ref,
                         ln1_g_ref, ln1_b_ref,
                         w1_ref, b1_ref, w2_ref, b2_ref,
                         ln2_g_ref, ln2_b_ref,
                         out_ref, ctx_ref):
    n = x_ref.shape[0]                # rows in this block (= block_b * S)

    x = x_ref[...]                    # (n, D)
    amask = amask_ref[...]            # (n, n) block-diagonal additive mask (0 / -1e9)

    # Fused Q|K|V projection: one MXU matmul with a 3*H*D_K wide output.
    qkv = jnp.dot(x, wqkv_ref[...],
                  preferred_element_type=jnp.float32) + bqkv_ref[...]

    scale = 1.0 / jnp.sqrt(jnp.float32(D_K))
    k_off = N_HEADS * D_K
    v_off = 2 * N_HEADS * D_K
    a_off = D_MODEL                   # attention probs start at lane D_MODEL in the slab

    for h in range(N_HEADS):          # static unroll; each head = 2 MXU dots + 2 stores
        q_h = qkv[:, h * D_K:(h + 1) * D_K]                       # (n, D_K)
        k_h = qkv[:, k_off + h * D_K:k_off + (h + 1) * D_K]       # (n, D_K)
        v_h = qkv[:, v_off + h * D_V:v_off + (h + 1) * D_V]       # (n, D_V)

        # All-pairs scores over the rows of this block; cross-sequence pairs are
        # killed by the block-diagonal additive mask (exp(-1e9) -> 0 exactly).
        s_h = jnp.dot(q_h, k_h.T,
                      preferred_element_type=jnp.float32) * scale + amask
        e = jnp.exp(s_h)                                           # (n, n)
        denom = jnp.sum(e, axis=-1, keepdims=True)                 # (n, 1)
        a_h = e * pl.reciprocal(denom, approx=False)               # EUP divide

        # Direct slice stores: probs into the merged output slab, context into
        # the VMEM ctx slab (no lane concatenates anywhere).
        out_ref[:, a_off + h * n:a_off + (h + 1) * n] = a_h
        ctx_ref[:, h * D_V:(h + 1) * D_V] = jnp.dot(
            a_h, v_h, preferred_element_type=jnp.float32)

    # Single W_O matmul over the assembled (n, H*D_V) context slab.
    attn_out = jnp.dot(ctx_ref[...], wo_ref[...],
                       preferred_element_type=jnp.float32) + bo_ref[...]
    y = _layer_norm(attn_out + x, ln1_g_ref[...], ln1_b_ref[...])

    # Position-wise FFN: Conv1d(k=1) -> ReLU -> Conv1d(k=1), residual + LayerNorm.
    h1 = jnp.maximum(
        jnp.dot(y, w1_ref[...], preferred_element_type=jnp.float32) + b1_ref[...],
        0.0)
    z = jnp.dot(h1, w2_ref[...], preferred_element_type=jnp.float32) + b2_ref[...]
    out_ref[:, :D_MODEL] = _layer_norm(z + y, ln2_g_ref[...], ln2_b_ref[...])


def encoder_layer(x, mask, params, *, block_b=None):
    """x: [B, S, D_MODEL], mask: [B, S, S] float {0,1} (1 == masked key)."""
    B, S, D = x.shape
    assert D == D_MODEL
    (wq, bq, wk, bk, wv, bv, wo, bo,
     ln1_g, ln1_b, w1, b1, w2, b2, ln2_g, ln2_b) = params

    # Fuse Q/K/V weights & biases so the kernel does a single projection matmul.
    wqkv = jnp.concatenate([wq, wk, wv], axis=1)      # (D, 3*H*D_K)
    bqkv = jnp.concatenate([bq, bk, bv], axis=1)      # (1, 3*H*D_K)

    if block_b is None:
        # One grid step at tiny B; set block_b = B // 2 on v7x (2 TCs) once the
        # per-block work dominates the ~600-cycle per-step overhead.
        block_b = B
    assert B % block_b == 0
    nblk = B // block_b
    nb = block_b * S                    # rows per block
    slab_w = D_MODEL + N_HEADS * nb     # merged output slab width

    # Block-diagonal additive mask, built host-side (free): within a block,
    # query rows of sequence j only see key rows of sequence j; everything else
    # (and padded keys) gets -1e9.  Equivalent to the reference hard-select for
    # padding masks.
    amask3 = jnp.where(mask > 0, jnp.float32(-1e9), jnp.float32(0.0))  # (B,S,S)
    am4 = amask3.reshape(nblk, block_b, S, S)
    eye = jnp.eye(block_b, dtype=bool)
    big = jnp.where(eye[None, :, None, :, None],
                    am4[:, :, :, None, :],
                    jnp.float32(-1e9))                # (nblk, block_b, S, block_b, S)
    amask2d = big.reshape(B * S, nb)                  # rows ordered as b*S + q

    # Fold batch into the row dimension so every matmul sees block_b*S rows.
    x2d = x.reshape(B * S, D)

    def const_spec(arr):
        nd = arr.ndim
        # NOTE: at nblk > 1 these constant blocks could use
        # pipeline_mode=pl.Buffered(1) to halve their VMEM footprint.
        return pl.BlockSpec(arr.shape, lambda i, nd=nd: (0,) * nd)

    kernel_params = (wqkv, bqkv, wo, bo, ln1_g, ln1_b,
                     w1, b1, w2, b2, ln2_g, ln2_b)

    in_specs = [
        pl.BlockSpec((nb, D), lambda i: (i, 0)),          # x row slab
        pl.BlockSpec((nb, nb), lambda i: (i, 0)),         # block-diagonal mask
    ] + [const_spec(p) for p in kernel_params]

    out_specs = pl.BlockSpec((nb, slab_w), lambda i: (i, 0))   # merged output slab
    out_shape = jax.ShapeDtypeStruct((B * S, slab_w), jnp.float32)

    out_slab = pl.pallas_call(
        encoder_layer_kernel,
        grid=(nblk,),
        in_specs=in_specs,
        out_specs=out_specs,
        out_shape=out_shape,
        scratch_shapes=[pltpu.VMEM((nb, N_HEADS * D_V), jnp.float32)],  # ctx slab
        compiler_params=pltpu.CompilerParams(
            dimension_semantics=("parallel",)),
    )(x2d, amask2d, *kernel_params)

    # Split the merged slab in the wrapper.
    out = out_slab[:, :D_MODEL].reshape(B, S, D)
    attn_slab = out_slab[:, D_MODEL:]                     # (B*S, H*nb)
    attn_r = attn_slab.reshape(B, S, N_HEADS, block_b, S)
    sel = jnp.arange(B) % block_b                          # local sequence index
    attn = attn_r[jnp.arange(B), :, :, sel, :]             # (B, S, H, S) diag blocks
    attn = attn.transpose(0, 2, 1, 3)                      # (B, H, S, S)
    return out, attn


def reference(x, mask, params):
    (wq, bq, wk, bk, wv, bv, wo, bo,
     ln1_g, ln1_b, w1, b1, w2, b2, ln2_g, ln2_b) = params
    B, S, D = x.shape
    q = (x @ wq + bq).reshape(B, S, N_HEADS, D_K).transpose(0, 2, 1, 3)
    k = (x @ wk + bk).reshape(B, S, N_HEADS, D_K).transpose(0, 2, 1, 3)
    v = (x @ wv + bv).reshape(B, S, N_HEADS, D_V).transpose(0, 2, 1, 3)
    scores = jnp.einsum('bhqd,bhkd->bhqk', q, k) / jnp.sqrt(jnp.float32(D_K))
    scores = jnp.where(mask[:, None, :, :] > 0, jnp.float32(-1e9), scores)
    attn = jax.nn.softmax(scores, axis=-1)
    ctx = jnp.einsum('bhqk,bhkd->bhqd', attn, v).transpose(0, 2, 1, 3)
    ctx = ctx.reshape(B, S, N_HEADS * D_V)
    ao = ctx @ wo + bo
    y = _layer_norm(ao + x, ln1_g[0], ln1_b[0])
    h1 = jax.nn.relu(y @ w1 + b1)
    z = h1 @ w2 + b2
    out = _layer_norm(z + y, ln2_g[0], ln2_b[0])
    return out, attn


def make_params(key):
    ks = jax.random.split(key, 8)
    scale = 0.1
    wq = scale * jax.random.normal(ks[0], (D_MODEL, N_HEADS * D_K), jnp.float32)
    wk = scale * jax.random.normal(ks[1], (D_MODEL, N_HEADS * D_K), jnp.float32)
    wv = scale * jax.random.normal(ks[2], (D_MODEL, N_HEADS * D_V), jnp.float32)
    wo = scale * jax.random.normal(ks[3], (N_HEADS * D_V, D_MODEL), jnp.float32)
    w1 = scale * jax.random.normal(ks[4], (D_MODEL, D_FF), jnp.float32)
    w2 = scale * jax.random.normal(ks[5], (D_FF, D_MODEL), jnp.float32)
    bq = 0.01 * jax.random.normal(ks[6], (1, N_HEADS * D_K), jnp.float32)
    bk = jnp.zeros((1, N_HEADS * D_K), jnp.float32)
    bv = jnp.zeros((1, N_HEADS * D_V), jnp.float32)
    bo = 0.01 * jax.random.normal(ks[7], (1, D_MODEL), jnp.float32)
    b1 = jnp.zeros((1, D_FF), jnp.float32)
    b2 = jnp.zeros((1, D_MODEL), jnp.float32)
    ln1_g = jnp.ones((1, D_MODEL), jnp.float32)
    ln1_b = jnp.zeros((1, D_MODEL), jnp.float32)
    ln2_g = jnp.ones((1, D_MODEL), jnp.float32)
    ln2_b = jnp.zeros((1, D_MODEL), jnp.float32)
    return (wq, bq, wk, bk, wv, bv, wo, bo,
            ln1_g, ln1_b, w1, b1, w2, b2, ln2_g, ln2_b)


if __name__ == "__main__":
    B, S = 2, 8
    key = jax.random.PRNGKey(0)
    kx, kp = jax.random.split(key)
    x = jax.random.normal(kx, (B, S, D_MODEL), jnp.float32)

    # Padding mask: batch 0 has no pads, batch 1 masks the last two key positions.
    key_is_pad = jnp.zeros((B, S), jnp.float32).at[1, S - 2:].set(1.0)
    mask = jnp.broadcast_to(key_is_pad[:, None, :], (B, S, S))

    params = make_params(kp)

    out, attn = encoder_layer(x, mask, params)
    out, attn = jax.block_until_ready((out, attn))

    ref_out, ref_attn = reference(x, mask, params)
    assert jnp.allclose(out, ref_out, atol=2e-4, rtol=2e-4), "output mismatch"
    assert jnp.allclose(attn, ref_attn, atol=2e-4, rtol=2e-4), "attn mismatch"

    print("KERNEL_OK")
</pallas_src>

<mosaic_0001>
module attributes {stable_mosaic.version = 11 : i64} {
  func.func @encoder_layer_kernel(%arg0: i32, %arg1: memref<16x32xf32, #tpu.memory_space<vmem>>, %arg2: memref<16x16xf32, #tpu.memory_space<vmem>>, %arg3: memref<32x96xf32, #tpu.memory_space<vmem>>, %arg4: memref<1x96xf32, #tpu.memory_space<vmem>>, %arg5: memref<32x32xf32, #tpu.memory_space<vmem>>, %arg6: memref<1x32xf32, #tpu.memory_space<vmem>>, %arg7: memref<1x32xf32, #tpu.memory_space<vmem>>, %arg8: memref<1x32xf32, #tpu.memory_space<vmem>>, %arg9: memref<32x64xf32, #tpu.memory_space<vmem>>, %arg10: memref<1x64xf32, #tpu.memory_space<vmem>>, %arg11: memref<64x32xf32, #tpu.memory_space<vmem>>, %arg12: memref<1x32xf32, #tpu.memory_space<vmem>>, %arg13: memref<1x32xf32, #tpu.memory_space<vmem>>, %arg14: memref<1x32xf32, #tpu.memory_space<vmem>>, %arg15: memref<16x96xf32, #tpu.memory_space<vmem>>, %arg16: memref<16x32xf32, #tpu.memory_space<vmem>>) attributes {dimension_semantics = [#tpu.dimension_semantics<parallel>], iteration_bounds = array<i64: 1>, scalar_prefetch = 0 : i64, scratch_operands = 1 : i64, tpu.core_type = #tpu.core_type<tc>, window_params = [{transform_indices = @transform_0, window_bounds = array<i64: 16, 32>}, {transform_indices = @transform_1, window_bounds = array<i64: 16, 16>}, {pipeline_mode = #tpu.pipeline_mode<synchronous>, transform_indices = @transform_2, window_bounds = array<i64: 32, 96>}, {pipeline_mode = #tpu.pipeline_mode<synchronous>, transform_indices = @transform_3, window_bounds = array<i64: 1, 96>}, {pipeline_mode = #tpu.pipeline_mode<synchronous>, transform_indices = @transform_4, window_bounds = array<i64: 32, 32>}, {pipeline_mode = #tpu.pipeline_mode<synchronous>, transform_indices = @transform_5, window_bounds = array<i64: 1, 32>}, {pipeline_mode = #tpu.pipeline_mode<synchronous>, transform_indices = @transform_6, window_bounds = array<i64: 1, 32>}, {pipeline_mode = #tpu.pipeline_mode<synchronous>, transform_indices = @transform_7, window_bounds = array<i64: 1, 32>}, {pipeline_mode = #tpu.pipeline_mode<synchronous>, transform_indices = @transform_8, window_bounds = array<i64: 32, 64>}, {pipeline_mode = #tpu.pipeline_mode<synchronous>, transform_indices = @transform_9, window_bounds = array<i64: 1, 64>}, {pipeline_mode = #tpu.pipeline_mode<synchronous>, transform_indices = @transform_10, window_bounds = array<i64: 64, 32>}, {pipeline_mode = #tpu.pipeline_mode<synchronous>, transform_indices = @transform_11, window_bounds = array<i64: 1, 32>}, {pipeline_mode = #tpu.pipeline_mode<synchronous>, transform_indices = @transform_12, window_bounds = array<i64: 1, 32>}, {pipeline_mode = #tpu.pipeline_mode<synchronous>, transform_indices = @transform_13, window_bounds = array<i64: 1, 32>}, {transform_indices = @transform_14, window_bounds = array<i64: 16, 96>}]} {
    %c0 = arith.constant 0 : index
    %c0_0 = arith.constant 0 : index
    %0 = vector.load %arg1[%c0, %c0_0] : memref<16x32xf32, #tpu.memory_space<vmem>>, vector<16x32xf32>
    %c0_1 = arith.constant 0 : index
    %c0_2 = arith.constant 0 : index
    %1 = vector.load %arg2[%c0_1, %c0_2] : memref<16x16xf32, #tpu.memory_space<vmem>>, vector<16x16xf32>
    %c0_3 = arith.constant 0 : index
    %c0_4 = arith.constant 0 : index
    %2 = vector.load %arg3[%c0_3, %c0_4] : memref<32x96xf32, #tpu.memory_space<vmem>>, vector<32x96xf32>
    %cst = arith.constant dense<0.000000e+00> : vector<16x96xf32>
    %3 = tpu.matmul %0, %2, %cst {dimension_numbers = #tpu.dot_dimension_numbers<[1], [0], [0], [1], [0, 0, 1, 1], [], []>} : vector<16x32xf32>, vector<32x96xf32>, vector<16x96xf32> -> vector<16x96xf32>
    %c0_5 = arith.constant 0 : index
    %c0_6 = arith.constant 0 : index
    %4 = vector.load %arg4[%c0_5, %c0_6] : memref<1x96xf32, #tpu.memory_space<vmem>>, vector<1x96xf32>
    %5 = vector.broadcast %4 : vector<1x96xf32> to vector<16x96xf32>
    %6 = arith.addf %3, %5 : vector<16x96xf32>
    %cst_7 = arith.constant 8.000000e+00 : f32
    %7 = math.sqrt %cst_7 : f32
    %cst_8 = arith.constant 1.000000e+00 : f32
    %8 = arith.divf %cst_8, %7 : f32
    %9 = vector.extract_strided_slice %6 {offsets = [0, 0], sizes = [16, 8], strides = [1, 1]} : vector<16x96xf32> to vector<16x8xf32>
    %10 = vector.extract_strided_slice %6 {offsets = [0, 32], sizes = [16, 8], strides = [1, 1]} : vector<16x96xf32> to vector<16x8xf32>
    %11 = vector.extract_strided_slice %6 {offsets = [0, 64], sizes = [16, 8], strides = [1, 1]} : vector<16x96xf32> to vector<16x8xf32>
    %12 = tpu.transpose %10, [1, 0] : vector<16x8xf32> -> vector<8x16xf32>
    %cst_9 = arith.constant dense<0.000000e+00> : vector<16x16xf32>
    %13 = tpu.matmul %9, %12, %cst_9 {dimension_numbers = #tpu.dot_dimension_numbers<[1], [0], [0], [1], [0, 0, 1, 1], [], []>} : vector<16x8xf32>, vector<8x16xf32>, vector<16x16xf32> -> vector<16x16xf32>
    %14 = vector.broadcast %8 : f32 to vector<16x16xf32>
    %15 = arith.mulf %13, %14 : vector<16x16xf32>
    %16 = arith.addf %15, %1 : vector<16x16xf32>
    %17 = math.exp %16 : vector<16x16xf32>
    %cst_10 = arith.constant dense<0.000000e+00> : vector<16xf32>
    %18 = vector.multi_reduction <add>, %17, %cst_10 [1] : vector<16x16xf32> to vector<16xf32>
    %19 = vector.shape_cast %18 : vector<16xf32> to vector<16x1xf32>
    %20 = tpu.reciprocal %19 : vector<16x1xf32> -> vector<16x1xf32>
    %21 = vector.broadcast %20 : vector<16x1xf32> to vector<16x16xf32>
    %22 = arith.mulf %17, %21 : vector<16x16xf32>
    %c0_11 = arith.constant 0 : index
    %c32 = arith.constant 32 : index
    %23 = vector.load %arg15[%c0_11, %c32] : memref<16x96xf32, #tpu.memory_space<vmem>>, vector<16x16xf32>
    tpu.vector_store %arg15[%c0_11, %c32], %22 {strides = array<i32>} : memref<16x96xf32, #tpu.memory_space<vmem>>, vector<16x16xf32>,
    %cst_12 = arith.constant dense<0.000000e+00> : vector<16x8xf32>
    %24 = tpu.matmul %22, %11, %cst_12 {dimension_numbers = #tpu.dot_dimension_numbers<[1], [0], [0], [1], [0, 0, 1, 1], [], []>} : vector<16x16xf32>, vector<16x8xf32>, vector<16x8xf32> -> vector<16x8xf32>
    %c0_13 = arith.constant 0 : index
    %c0_14 = arith.constant 0 : index
    %25 = vector.load %arg16[%c0_13, %c0_14] : memref<16x32xf32, #tpu.memory_space<vmem>>, vector<16x8xf32>
    tpu.vector_store %arg16[%c0_13, %c0_14], %24 {strides = array<i32>} : memref<16x32xf32, #tpu.memory_space<vmem>>, vector<16x8xf32>,
    %26 = vector.extract_strided_slice %6 {offsets = [0, 8], sizes = [16, 8], strides = [1, 1]} : vector<16x96xf32> to vector<16x8xf32>
    %27 = vector.extract_strided_slice %6 {offsets = [0, 40], sizes = [16, 8], strides = [1, 1]} : vector<16x96xf32> to vector<16x8xf32>
    %28 = vector.extract_strided_slice %6 {offsets = [0, 72], sizes = [16, 8], strides = [1, 1]} : vector<16x96xf32> to vector<16x8xf32>
    %29 = tpu.transpose %27, [1, 0] : vector<16x8xf32> -> vector<8x16xf32>
    %cst_15 = arith.constant dense<0.000000e+00> : vector<16x16xf32>
    %30 = tpu.matmul %26, %29, %cst_15 {dimension_numbers = #tpu.dot_dimension_numbers<[1], [0], [0], [1], [0, 0, 1, 1], [], []>} : vector<16x8xf32>, vector<8x16xf32>, vector<16x16xf32> -> vector<16x16xf32>
    %31 = vector.broadcast %8 : f32 to vector<16x16xf32>
    %32 = arith.mulf %30, %31 : vector<16x16xf32>
    %33 = arith.addf %32, %1 : vector<16x16xf32>
    %34 = math.exp %33 : vector<16x16xf32>
    %cst_16 = arith.constant dense<0.000000e+00> : vector<16xf32>
    %35 = vector.multi_reduction <add>, %34, %cst_16 [1] : vector<16x16xf32> to vector<16xf32>
    %36 = vector.shape_cast %35 : vector<16xf32> to vector<16x1xf32>
    %37 = tpu.reciprocal %36 : vector<16x1xf32> -> vector<16x1xf32>
    %38 = vector.broadcast %37 : vector<16x1xf32> to vector<16x16xf32>
    %39 = arith.mulf %34, %38 : vector<16x16xf32>
    %c0_17 = arith.constant 0 : index
    %c48 = arith.constant 48 : index
    %40 = vector.load %arg15[%c0_17, %c48] : memref<16x96xf32, #tpu.memory_space<vmem>>, vector<16x16xf32>
    tpu.vector_store %arg15[%c0_17, %c48], %39 {strides = array<i32>} : memref<16x96xf32, #tpu.memory_space<vmem>>, vector<16x16xf32>,
    %cst_18 = arith.constant dense<0.000000e+00> : vector<16x8xf32>
    %41 = tpu.matmul %39, %28, %cst_18 {dimension_numbers = #tpu.dot_dimension_numbers<[1], [0], [0], [1], [0, 0, 1, 1], [], []>} : vector<16x16xf32>, vector<16x8xf32>, vector<16x8xf32> -> vector<16x8xf32>
    %c0_19 = arith.constant 0 : index
    %c8 = arith.constant 8 : index
    %42 = vector.load %arg16[%c0_19, %c8] : memref<16x32xf32, #tpu.memory_space<vmem>>, vector<16x8xf32>
    tpu.vector_store %arg16[%c0_19, %c8], %41 {strides = array<i32>} : memref<16x32xf32, #tpu.memory_space<vmem>>, vector<16x8xf32>,
    %43 = vector.extract_strided_slice %6 {offsets = [0, 16], sizes = [16, 8], strides = [1, 1]} : vector<16x96xf32> to vector<16x8xf32>
    %44 = vector.extract_strided_slice %6 {offsets = [0, 48], sizes = [16, 8], strides = [1, 1]} : vector<16x96xf32> to vector<16x8xf32>
    %45 = vector.extract_strided_slice %6 {offsets = [0, 80], sizes = [16, 8], strides = [1, 1]} : vector<16x96xf32> to vector<16x8xf32>
    %46 = tpu.transpose %44, [1, 0] : vector<16x8xf32> -> vector<8x16xf32>
    %cst_20 = arith.constant dense<0.000000e+00> : vector<16x16xf32>
    %47 = tpu.matmul %43, %46, %cst_20 {dimension_numbers = #tpu.dot_dimension_numbers<[1], [0], [0], [1], [0, 0, 1, 1], [], []>} : vector<16x8xf32>, vector<8x16xf32>, vector<16x16xf32> -> vector<16x16xf32>
    %48 = vector.broadcast %8 : f32 to vector<16x16xf32>
    %49 = arith.mulf %47, %48 : vector<16x16xf32>
    %50 = arith.addf %49, %1 : vector<16x16xf32>
    %51 = math.exp %50 : vector<16x16xf32>
    %cst_21 = arith.constant dense<0.000000e+00> : vector<16xf32>
    %52 = vector.multi_reduction <add>, %51, %cst_21 [1] : vector<16x16xf32> to vector<16xf32>
    %53 = vector.shape_cast %52 : vector<16xf32> to vector<16x1xf32>
    %54 = tpu.reciprocal %53 : vector<16x1xf32> -> vector<16x1xf32>
    %55 = vector.broadcast %54 : vector<16x1xf32> to vector<16x16xf32>
    %56 = arith.mulf %51, %55 : vector<16x16xf32>
    %c0_22 = arith.constant 0 : index
    %c64 = arith.constant 64 : index
    %57 = vector.load %arg15[%c0_22, %c64] : memref<16x96xf32, #tpu.memory_space<vmem>>, vector<16x16xf32>
    tpu.vector_store %arg15[%c0_22, %c64], %56 {strides = array<i32>} : memref<16x96xf32, #tpu.memory_space<vmem>>, vector<16x16xf32>,
    %cst_23 = arith.constant dense<0.000000e+00> : vector<16x8xf32>
    %58 = tpu.matmul %56, %45, %cst_23 {dimension_numbers = #tpu.dot_dimension_numbers<[1], [0], [0], [1], [0, 0, 1, 1], [], []>} : vector<16x16xf32>, vector<16x8xf32>, vector<16x8xf32> -> vector<16x8xf32>
    %c0_24 = arith.constant 0 : index
    %c16 = arith.constant 16 : index
    %59 = vector.load %arg16[%c0_24, %c16] : memref<16x32xf32, #tpu.memory_space<vmem>>, vector<16x8xf32>
    tpu.vector_store %arg16[%c0_24, %c16], %58 {strides = array<i32>} : memref<16x32xf32, #tpu.memory_space<vmem>>, vector<16x8xf32>,
    %60 = vector.extract_strided_slice %6 {offsets = [0, 24], sizes = [16, 8], strides = [1, 1]} : vector<16x96xf32> to vector<16x8xf32>
    %61 = vector.extract_strided_slice %6 {offsets = [0, 56], sizes = [16, 8], strides = [1, 1]} : vector<16x96xf32> to vector<16x8xf32>
    %62 = vector.extract_strided_slice %6 {offsets = [0, 88], sizes = [16, 8], strides = [1, 1]} : vector<16x96xf32> to vector<16x8xf32>
    %63 = tpu.transpose %61, [1, 0] : vector<16x8xf32> -> vector<8x16xf32>
    %cst_25 = arith.constant dense<0.000000e+00> : vector<16x16xf32>
    %64 = tpu.matmul %60, %63, %cst_25 {dimension_numbers = #tpu.dot_dimension_numbers<[1], [0], [0], [1], [0, 0, 1, 1], [], []>} : vector<16x8xf32>, vector<8x16xf32>, vector<16x16xf32> -> vector<16x16xf32>
    %65 = vector.broadcast %8 : f32 to vector<16x16xf32>
    %66 = arith.mulf %64, %65 : vector<16x16xf32>
    %67 = arith.addf %66, %1 : vector<16x16xf32>
    %68 = math.exp %67 : vector<16x16xf32>
    %cst_26 = arith.constant dense<0.000000e+00> : vector<16xf32>
    %69 = vector.multi_reduction <add>, %68, %cst_26 [1] : vector<16x16xf32> to vector<16xf32>
    %70 = vector.shape_cast %69 : vector<16xf32> to vector<16x1xf32>
    %71 = tpu.reciprocal %70 : vector<16x1xf32> -> vector<16x1xf32>
    %72 = vector.broadcast %71 : vector<16x1xf32> to vector<16x16xf32>
    %73 = arith.mulf %68, %72 : vector<16x16xf32>
    %c0_27 = arith.constant 0 : index
    %c80 = arith.constant 80 : index
    %74 = vector.load %arg15[%c0_27, %c80] : memref<16x96xf32, #tpu.memory_space<vmem>>, vector<16x16xf32>
    tpu.vector_store %arg15[%c0_27, %c80], %73 {strides = array<i32>} : memref<16x96xf32, #tpu.memory_space<vmem>>, vector<16x16xf32>,
    %cst_28 = arith.constant dense<0.000000e+00> : vector<16x8xf32>
    %75 = tpu.matmul %73, %62, %cst_28 {dimension_numbers = #tpu.dot_dimension_numbers<[1], [0], [0], [1], [0, 0, 1, 1], [], []>} : vector<16x16xf32>, vector<16x8xf32>, vector<16x8xf32> -> vector<16x8xf32>
    %c0_29 = arith.constant 0 : index
    %c24 = arith.constant 24 : index
    %76 = vector.load %arg16[%c0_29, %c24] : memref<16x32xf32, #tpu.memory_space<vmem>>, vector<16x8xf32>
    tpu.vector_store %arg16[%c0_29, %c24], %75 {strides = array<i32>} : memref<16x32xf32, #tpu.memory_space<vmem>>, vector<16x8xf32>,
    %c0_30 = arith.constant 0 : index
    %c0_31 = arith.constant 0 : index
    %77 = vector.load %arg16[%c0_30, %c0_31] : memref<16x32xf32, #tpu.memory_space<vmem>>, vector<16x32xf32>
    %c0_32 = arith.constant 0 : index
    %c0_33 = arith.constant 0 : index
    %78 = vector.load %arg5[%c0_32, %c0_33] : memref<32x32xf32, #tpu.memory_space<vmem>>, vector<32x32xf32>
    %cst_34 = arith.constant dense<0.000000e+00> : vector<16x32xf32>
    %79 = tpu.matmul %77, %78, %cst_34 {dimension_numbers = #tpu.dot_dimension_numbers<[1], [0], [0], [1], [0, 0, 1, 1], [], []>} : vector<16x32xf32>, vector<32x32xf32>, vector<16x32xf32> -> vector<16x32xf32>
    %c0_35 = arith.constant 0 : index
    %c0_36 = arith.constant 0 : index
    %80 = vector.load %arg6[%c0_35, %c0_36] : memref<1x32xf32, #tpu.memory_space<vmem>>, vector<1x32xf32>
    %81 = vector.broadcast %80 : vector<1x32xf32> to vector<16x32xf32>
    %82 = arith.addf %79, %81 : vector<16x32xf32>
    %83 = arith.addf %82, %0 : vector<16x32xf32>
    %c0_37 = arith.constant 0 : index
    %c0_38 = arith.constant 0 : index
    %84 = vector.load %arg7[%c0_37, %c0_38] : memref<1x32xf32, #tpu.memory_space<vmem>>, vector<1x32xf32>
    %c0_39 = arith.constant 0 : index
    %c0_40 = arith.constant 0 : index
    %85 = vector.load %arg8[%c0_39, %c0_40] : memref<1x32xf32, #tpu.memory_space<vmem>>, vector<1x32xf32>
    %cst_41 = arith.constant dense<0.000000e+00> : vector<16xf32>
    %86 = vector.multi_reduction <add>, %83, %cst_41 [1] : vector<16x32xf32> to vector<16xf32>
    %87 = vector.shape_cast %86 : vector<16xf32> to vector<16x1xf32>
    %cst_42 = arith.constant 3.200000e+01 : f32
    %88 = vector.broadcast %cst_42 : f32 to vector<16x1xf32>
    %89 = arith.divf %87, %88 : vector<16x1xf32>
    %90 = vector.broadcast %89 : vector<16x1xf32> to vector<16x32xf32>
    %91 = arith.subf %83, %90 : vector<16x32xf32>
    %92 = arith.mulf %91, %91 : vector<16x32xf32>
    %cst_43 = arith.constant dense<0.000000e+00> : vector<16xf32>
    %93 = vector.multi_reduction <add>, %92, %cst_43 [1] : vector<16x32xf32> to vector<16xf32>
    %94 = vector.shape_cast %93 : vector<16xf32> to vector<16x1xf32>
    %cst_44 = arith.constant 3.200000e+01 : f32
    %95 = vector.broadcast %cst_44 : f32 to vector<16x1xf32>
    %96 = arith.divf %94, %95 : vector<16x1xf32>
    %97 = vector.broadcast %89 : vector<16x1xf32> to vector<16x32xf32>
    %98 = arith.subf %83, %97 : vector<16x32xf32>
    %cst_45 = arith.constant 9.99999974E-6 : f32
    %99 = vector.broadcast %cst_45 : f32 to vector<16x1xf32>
    %100 = arith.addf %96, %99 : vector<16x1xf32>
    %101 = math.rsqrt %100 : vector<16x1xf32>
    %102 = vector.broadcast %101 : vector<16x1xf32> to vector<16x32xf32>
    %103 = arith.mulf %98, %102 : vector<16x32xf32>
    %104 = vector.broadcast %84 : vector<1x32xf32> to vector<16x32xf32>
    %105 = arith.mulf %103, %104 : vector<16x32xf32>
    %106 = vector.broadcast %85 : vector<1x32xf32> to vector<16x32xf32>
    %107 = arith.addf %105, %106 : vector<16x32xf32>
    %c0_46 = arith.constant 0 : index
    %c0_47 = arith.constant 0 : index
    %108 = vector.load %arg9[%c0_46, %c0_47] : memref<32x64xf32, #tpu.memory_space<vmem>>, vector<32x64xf32>
    %cst_48 = arith.constant dense<0.000000e+00> : vector<16x64xf32>
    %109 = tpu.matmul %107, %108, %cst_48 {dimension_numbers = #tpu.dot_dimension_numbers<[1], [0], [0], [1], [0, 0, 1, 1], [], []>} : vector<16x32xf32>, vector<32x64xf32>, vector<16x64xf32> -> vector<16x64xf32>
    %c0_49 = arith.constant 0 : index
    %c0_50 = arith.constant 0 : index
    %110 = vector.load %arg10[%c0_49, %c0_50] : memref<1x64xf32, #tpu.memory_space<vmem>>, vector<1x64xf32>
    %111 = vector.broadcast %110 : vector<1x64xf32> to vector<16x64xf32>
    %112 = arith.addf %109, %111 : vector<16x64xf32>
    %cst_51 = arith.constant 0.000000e+00 : f32
    %113 = vector.broadcast %cst_51 : f32 to vector<16x64xf32>
    %114 = arith.maximumf %112, %113 : vector<16x64xf32>
    %c0_52 = arith.constant 0 : index
    %c0_53 = arith.constant 0 : index
    %115 = vector.load %arg11[%c0_52, %c0_53] : memref<64x32xf32, #tpu.memory_space<vmem>>, vector<64x32xf32>
    %cst_54 = arith.constant dense<0.000000e+00> : vector<16x32xf32>
    %116 = tpu.matmul %114, %115, %cst_54 {dimension_numbers = #tpu.dot_dimension_numbers<[1], [0], [0], [1], [0, 0, 1, 1], [], []>} : vector<16x64xf32>, vector<64x32xf32>, vector<16x32xf32> -> vector<16x32xf32>
    %c0_55 = arith.constant 0 : index
    %c0_56 = arith.constant 0 : index
    %117 = vector.load %arg12[%c0_55, %c0_56] : memref<1x32xf32, #tpu.memory_space<vmem>>, vector<1x32xf32>
    %118 = vector.broadcast %117 : vector<1x32xf32> to vector<16x32xf32>
    %119 = arith.addf %116, %118 : vector<16x32xf32>
    %120 = arith.addf %119, %107 : vector<16x32xf32>
    %c0_57 = arith.constant 0 : index
    %c0_58 = arith.constant 0 : index
    %121 = vector.load %arg13[%c0_57, %c0_58] : memref<1x32xf32, #tpu.memory_space<vmem>>, vector<1x32xf32>
    %c0_59 = arith.constant 0 : index
    %c0_60 = arith.constant 0 : index
    %122 = vector.load %arg14[%c0_59, %c0_60] : memref<1x32xf32, #tpu.memory_space<vmem>>, vector<1x32xf32>
    %cst_61 = arith.constant dense<0.000000e+00> : vector<16xf32>
    %123 = vector.multi_reduction <add>, %120, %cst_61 [1] : vector<16x32xf32> to vector<16xf32>
    %124 = vector.shape_cast %123 : vector<16xf32> to vector<16x1xf32>
    %cst_62 = arith.constant 3.200000e+01 : f32
    %125 = vector.broadcast %cst_62 : f32 to vector<16x1xf32>
    %126 = arith.divf %124, %125 : vector<16x1xf32>
    %127 = vector.broadcast %126 : vector<16x1xf32> to vector<16x32xf32>
    %128 = arith.subf %120, %127 : vector<16x32xf32>
    %129 = arith.mulf %128, %128 : vector<16x32xf32>
    %cst_63 = arith.constant dense<0.000000e+00> : vector<16xf32>
    %130 = vector.multi_reduction <add>, %129, %cst_63 [1] : vector<16x32xf32> to vector<16xf32>
    %131 = vector.shape_cast %130 : vector<16xf32> to vector<16x1xf32>
    %cst_64 = arith.constant 3.200000e+01 : f32
    %132 = vector.broadcast %cst_64 : f32 to vector<16x1xf32>
    %133 = arith.divf %131, %132 : vector<16x1xf32>
    %134 = vector.broadcast %126 : vector<16x1xf32> to vector<16x32xf32>
    %135 = arith.subf %120, %134 : vector<16x32xf32>
    %cst_65 = arith.constant 9.99999974E-6 : f32
    %136 = vector.broadcast %cst_65 : f32 to vector<16x1xf32>
    %137 = arith.addf %133, %136 : vector<16x1xf32>
    %138 = math.rsqrt %137 : vector<16x1xf32>
    %139 = vector.broadcast %138 : vector<16x1xf32> to vector<16x32xf32>
    %140 = arith.mulf %135, %139 : vector<16x32xf32>
    %141 = vector.broadcast %121 : vector<1x32xf32> to vector<16x32xf32>
    %142 = arith.mulf %140, %141 : vector<16x32xf32>
    %143 = vector.broadcast %122 : vector<1x32xf32> to vector<16x32xf32>
    %144 = arith.addf %142, %143 : vector<16x32xf32>
    %c0_66 = arith.constant 0 : index
    %c0_67 = arith.constant 0 : index
    %145 = vector.load %arg15[%c0_66, %c0_67] : memref<16x96xf32, #tpu.memory_space<vmem>>, vector<16x32xf32>
    tpu.vector_store %arg15[%c0_66, %c0_67], %144 {strides = array<i32>} : memref<16x96xf32, #tpu.memory_space<vmem>>, vector<16x32xf32>,
    return
  }
  func.func @transform_0(%arg0: i32) -> (i32, i32) {
    %c0_i32 = arith.constant 0 : i32
    %c0_i32_0 = arith.constant 0 : i32
    return %arg0, %c0_i32 : i32, i32
  }
  func.func @transform_1(%arg0: i32) -> (i32, i32) {
    %c0_i32 = arith.constant 0 : i32
    %c0_i32_0 = arith.constant 0 : i32
    return %arg0, %c0_i32 : i32, i32
  }
  func.func @transform_2(%arg0: i32) -> (i32, i32) {
    %c0_i32 = arith.constant 0 : i32
    %c0_i32_0 = arith.constant 0 : i32
    %c0_i32_1 = arith.constant 0 : i32
    return %c0_i32, %c0_i32_0 : i32, i32
  }
  func.func @transform_3(%arg0: i32) -> (i32, i32) {
    %c0_i32 = arith.constant 0 : i32
    %c0_i32_0 = arith.constant 0 : i32
    %c0_i32_1 = arith.constant 0 : i32
    return %c0_i32, %c0_i32_0 : i32, i32
  }
  func.func @transform_4(%arg0: i32) -> (i32, i32) {
    %c0_i32 = arith.constant 0 : i32
    %c0_i32_0 = arith.constant 0 : i32
    %c0_i32_1 = arith.constant 0 : i32
    return %c0_i32, %c0_i32_0 : i32, i32
  }
  func.func @transform_5(%arg0: i32) -> (i32, i32) {
    %c0_i32 = arith.constant 0 : i32
    %c0_i32_0 = arith.constant 0 : i32
    %c0_i32_1 = arith.constant 0 : i32
    return %c0_i32, %c0_i32_0 : i32, i32
  }
  func.func @transform_6(%arg0: i32) -> (i32, i32) {
    %c0_i32 = arith.constant 0 : i32
    %c0_i32_0 = arith.constant 0 : i32
    %c0_i32_1 = arith.constant 0 : i32
    return %c0_i32, %c0_i32_0 : i32, i32
  }
  func.func @transform_7(%arg0: i32) -> (i32, i32) {
    %c0_i32 = arith.constant 0 : i32
    %c0_i32_0 = arith.constant 0 : i32
    %c0_i32_1 = arith.constant 0 : i32
    return %c0_i32, %c0_i32_0 : i32, i32
  }
  func.func @transform_8(%arg0: i32) -> (i32, i32) {
    %c0_i32 = arith.constant 0 : i32
    %c0_i32_0 = arith.constant 0 : i32
    %c0_i32_1 = arith.constant 0 : i32
    return %c0_i32, %c0_i32_0 : i32, i32
  }
  func.func @transform_9(%arg0: i32) -> (i32, i32) {
    %c0_i32 = arith.constant 0 : i32
    %c0_i32_0 = arith.constant 0 : i32
    %c0_i32_1 = arith.constant 0 : i32
    return %c0_i32, %c0_i32_0 : i32, i32
  }
  func.func @transform_10(%arg0: i32) -> (i32, i32) {
    %c0_i32 = arith.constant 0 : i32
    %c0_i32_0 = arith.constant 0 : i32
    %c0_i32_1 = arith.constant 0 : i32
    return %c0_i32, %c0_i32_0 : i32, i32
  }
  func.func @transform_11(%arg0: i32) -> (i32, i32) {
    %c0_i32 = arith.constant 0 : i32
    %c0_i32_0 = arith.constant 0 : i32
    %c0_i32_1 = arith.constant 0 : i32
    return %c0_i32, %c0_i32_0 : i32, i32
  }
  func.func @transform_12(%arg0: i32) -> (i32, i32) {
    %c0_i32 = arith.constant 0 : i32
    %c0_i32_0 = arith.constant 0 : i32
    %c0_i32_1 = arith.constant 0 : i32
    return %c0_i32, %c0_i32_0 : i32, i32
  }
  func.func @transform_13(%arg0: i32) -> (i32, i32) {
    %c0_i32 = arith.constant 0 : i32
    %c0_i32_0 = arith.constant 0 : i32
    %c0_i32_1 = arith.constant 0 : i32
    return %c0_i32, %c0_i32_0 : i32, i32
  }
  func.func @transform_14(%arg0: i32) -> (i32, i32) {
    %c0_i32 = arith.constant 0 : i32
    %c0_i32_0 = arith.constant 0 : i32
    return %arg0, %c0_i32 : i32, i32
  }
}

</mosaic_0001>

<bundles_post_ra>
// kernel: tpu_custom_call.1
= control target key start
LH: loop header
LB: loop body
LE: loop exit
PB: predicated region body
PF: predicated region fallthrough
CT: control target
= control target key end

     0   :  { %19 = vsyncpa [#allocation4], 0  ;;  %s2265_s0 = inlined_call_operand.hbm [shape: f32[16,32], index: 0, kind: input, shape index: {}]   ;;  %s2266_s1 = inlined_call_operand.hbm [shape: f32[16,16], index: 1, kind: input, shape index: {}]   ;;  %s2267_s2 = inlined_call_operand.vmem [shape: f32[32,96], index: 2, kind: input, shape index: {}]   ;;  %s2268_s3 = inlined_call_operand.vmem [shape: f32[1,96], index: 3, kind: input, shape index: {}]   ;;  %s2269_s4 = inlined_call_operand.vmem [shape: f32[32,32], index: 4, kind: input, shape index: {}]   ;;  %s2270_s5 = inlined_call_operand.vmem [shape: f32[1,32], index: 5, kind: input, shape index: {}]   ;;  %s2271_s6 = inlined_call_operand.vmem [shape: f32[1,32], index: 6, kind: input, shape index: {}]   ;;  %s2272_s7 = inlined_call_operand.vmem [shape: f32[1,32], index: 7, kind: input, shape index: {}]   ;;  %s2273_s8 = inlined_call_operand.vmem [shape: f32[32,64], index: 8, kind: input, shape index: {}]   ;;  %s2274_s9 = inlined_call_operand.vmem [shape: f32[1,64], index: 9, kind: input, shape index: {}]   ;;  %s2275_s10 = inlined_call_operand.vmem [shape: f32[64,32], index: 10, kind: input, shape index: {}]   ;;  %s2276_s11 = inlined_call_operand.vmem [shape: f32[1,32], index: 11, kind: input, shape index: {}]   ;;  %s2277_s12 = inlined_call_operand.vmem [shape: f32[1,32], index: 12, kind: input, shape index: {}]   ;;  %s2278_s13 = inlined_call_operand.vmem [shape: f32[1,32], index: 13, kind: input, shape index: {}]   ;;  %s2279_s14 = inlined_call_operand.hbm [shape: f32[16,96], index: 14, kind: output, shape index: {}]  }
   0x1   :  { %20 = vsyncpa [#allocation7], 0 }
   0x2   :  { %21 = vsyncpa [#allocation5], 0  ;;  %s1885_s29 = smov [#allocation3]   ;;  %s1813_s17 = scalar_lea.hbm %s2265_s0, 256 }
   0x3   :  { %s27_s30 = sshll.u32 %s1885_s29, 4  ;;  %p1814_p0 = scmp.ne.s32.totalorder %s2265_s0, %s1813_s17  ;;  %s28_s30 = int_to_ptr.vmem [resolvable:$true] %s27_s30 }
   0x4   :  { %p1817_p1 = scmp.lt.u32.totalorder %s1813_s17, %s2265_s0 }
   0x6   :  { %p1819_p2 = pnand %p1817_p1, %p1814_p0 }
   0x8   :  { %1822 = shalt.err (!%p1819_p2)
}
   0x9   :  { %s1823_s22 = scalar_lea.vmem %s28_s30, 256  ;;  %p1828_p4 = scmp.lt.s32.totalorder %s28_s30, %s28_s30 }
   0xa   :  { %p1824_p3 = scmp.ne.s32.totalorder %s28_s30, %s1823_s22  ;;  %p1829_p5 = scmp.lt.s32.totalorder %s1823_s22, %s1823_s22 }
   0xc   :  { %p1830_p6 = por %p1829_p5, %p1828_p4 }
   0xe   :  { %p1831_p7 = pnand %p1830_p6, %p1824_p3 }
  0x10   :  { %1834 = shalt.err (!%p1831_p7)
}
  0x11   :  { %s1886_s23 = smov 128   ;;  %s1887_s24 = smov 8  }
  0x12   :  { %33 = dma.hbm_to_vmem [thread:$0]  %s2265_s0, 256, %s28_s30, [#allocation4], %s1886_s23, %s1886_s23, %s1887_s24  }
  0x13   :  { %s1888_s27 = smov [#allocation6]   ;;  %s1835_s16 = scalar_lea.hbm %s2266_s1, 256 }
  0x14   :  { %s39_s28 = sshll.u32 %s1888_s27, 4  ;;  %p1836_p8 = scmp.ne.s32.totalorder %s2266_s1, %s1835_s16  ;;  %s40_s28 = int_to_ptr.vmem [resolvable:$true] %s39_s28 }
  0x15   :  { %p1839_p9 = scmp.lt.u32.totalorder %s1835_s16, %s2266_s1 }
  0x17   :  { %p1841_p10 = pnand %p1839_p9, %p1836_p8 }
  0x19   :  { %1844 = shalt.err (!%p1841_p10)
}
  0x1a   :  { %s1845_s21 = scalar_lea.vmem %s40_s28, 256  ;;  %p1850_p12 = scmp.lt.s32.totalorder %s40_s28, %s40_s28 }
  0x1b   :  { %p1846_p11 = scmp.ne.s32.totalorder %s40_s28, %s1845_s21  ;;  %p1851_p13 = scmp.lt.s32.totalorder %s1845_s21, %s1845_s21 }
  0x1d   :  { %p1852_p0 = por %p1851_p13, %p1850_p12 }
  0x1f   :  { %p1853_p1 = pnand %p1852_p0, %p1846_p11 }
  0x21   :  { %1856 = shalt.err (!%p1853_p1)
}
  0x22   :  { %45 = dma.hbm_to_vmem [thread:$0]  %s2266_s1, 256, %s40_s28, [#allocation7], %s1886_s23, %s1886_s23, %s1887_s24  }
  0x23   :  { %1879 = dma.done.wait [#allocation4], 256  }
  0x24   :  { %1880 = vsyncadd [#allocation4], 4294967040 }
  0x25   :  { %1881 = dma.done.wait [#allocation7], 256  }
  0x26   :  { %1882 = vsyncadd [#allocation7], 4294967040  ;;  %vm91_vm0 = vcmask 261120   ;;  %v80_v0 = vld [vmem:[%s2267_s2] sm:$0xff]  ;;  %v81_v1 = vld [vmem:[%s2267_s2 + $0x8] sm:$0xff]  ;;  %vm179_vm1 = vcmask 64512  }
  0x27   :  { %v82_v2 = vld [vmem:[%s2267_s2 + $0x10] sm:$0xff]  ;;  %v1634_v3 = vpack.c.bf16 %v81_v1, %v80_v0  ;;  %v83_v4 = vld [vmem:[%s2267_s2 + $0x18] sm:$0xff]  ;;  %v1426_v8 = vld [vmem:[%s2268_s3] ss:$0 sm:$0xff]  ;;  %s1889_s2 = smov 120   ;;  %s1890_s18 = smov 96  }
  0x28   :  { %v2021_v5 = vld [vmem:[#allocation3] sm:$0xff]  ;;  %v1638_v6 = vpack.c.bf16 %v83_v4, %v82_v2  ;;  %v2025_v7 = vld [vmem:[#allocation3 + $0x8] sm:$0xff]  ;;  %s1891_s3 = smov 88   ;;  %s1892_s19 = smov 64   ;;  %vm2050_vm2 = vmpackc.low %vm179_vm1, %vm179_vm1  ;;  %vm271_vm3 = vcmask 130048   ;;  %vm593_vm4 = vcmask 130112  }
  0x29   :  { %1534 = vmatprep.mubr.msk.f32.mxu1 %vm91_vm0, %v2021_v5  ;;  %1635 = vmatprep.subr.bf16.mxu1 %v1634_v3  ;;  %v2066_v29 = vld [vmem:[#allocation6 + $0x8] sm:$0xff]  ;;  %v2068_v32 = vld [vmem:[#allocation6] sm:$0xff]  ;;  %s1893_s20 = smov 80   ;;  %s1894_s21 = smov 112   ;;  %vm809_vm5 = vcmask 195712   ;;  %vm1025_vm6 = vcmask 261312  }
  0x2a   :  { %1637 = vmatpush3.bf16.msra.mxu1 %v1634_v3  ;;  %s1895_s0 = smov 72   ;;  %s1896_s30 = smov 56   ;;  %vm1278_vm7 = vcmask 523264   ;;  %vm290_vm8 = vcmask 392448   ;;  %vm497_vm9 = vcmask 523648   ;;  %vm713_vm10 = vcmask 654848  }
  0x2b   :  { %1639 = vmatprep.subr.bf16.mxu1 %v1638_v6  ;;  %s1897_s22 = smov 104   ;;  %s1898_s25 = smov 48   ;;  %vm929_vm11 = vcmask 786048  }
  0x2c   :  { %s1899_s26 = smov 40   ;;  %s1900_s27 = smov 16  }
  0x2e   :  { %1641 = vmatpush3.bf16.msra.mxu1 %v1638_v6 }
  0x31   :  { %1535 = vmatmul.mubr.msk.f32.vlgmr.msra.gmra.mrb[0].mxu1 %vm91_vm0, %v2025_v7 }
 0x104   :  { %v1536_v9 = vpop.f32.mrb[0].mxu1 }
 0x105   :  { %v2032_v10 = vadd.f32 %v1536_v9, %v1426_v8  ;;  %v164_v11 = vpop.f32.mrb[1].mxu1 }
 0x106   :  { %v2034_v12 = vadd.f32 %v1426_v8, %v164_v11 }
 0x108   :  { %380 = vrot.lane.b32.xlu1 %v2034_v12, %s1889_s2  ;;  %1541 = vmatprep.mubr.msk.f32.mxu1 %vm179_vm1, %v2034_v12  ;;  %v2041_v13 = vpack.i.bf16 %v2032_v10, %v2034_v12 }
 0x10a   :  { %1734 = vrot.lane.b32.xlu0 %v2041_v13, %s1890_s18 }
 0x10c   :  { %382 = vrot.lane.b32.xlu1 %v2032_v10, %s1889_s2 }
 0x10e   :  { %1739 = vrot.lane.b32.xlu0 %v2041_v13, %s1891_s3  ;;  %s1901_s3 = smov 24  }
 0x110   :  { %1744 = vrot.lane.b32.xlu1 %v2041_v13, %s1892_s19 }
 0x17a   :  { %v381_v14 = vpop.permute.xlu1 %380 }
 0x17c   :  { %v1735_v15 = vpop.permute.xlu0 %1734 }
 0x17d   :  { %v1737_v16 = vunpack.i.h.bf16 %v1735_v15  ;;  %v1736_v17 = vunpack.i.l.bf16 %v1735_v15 }
 0x17e   :  { %v383_v18 = vpop.permute.xlu1 %382 }
 0x17f   :  { %v1642_v20 = vpack.c.bf16 %v1737_v16, %v1736_v17 }
 0x180   :  { %v1740_v21 = vpop.permute.xlu0 %1739 }
 0x181   :  { %v1742_v22 = vunpack.i.h.bf16 %v1740_v21  ;;  %v1741_v23 = vunpack.i.l.bf16 %v1740_v21  ;;  %1644 = vmatprep.subr.msk.bf16.mxu1 %vm2050_vm2, %v1642_v20 }
 0x182   :  { %v1745_v24 = vpop.permute.xlu1 %1744  ;;  %1647 = vmatpush3.bf16.xpose.msk.msra.mxu1 %vm2050_vm2, %v1642_v20 }
 0x183   :  { %v1652_v25 = vpack.c.bf16 %v1742_v22, %v1741_v23  ;;  %v1747_v26 = vunpack.i.h.bf16 %v1745_v24  ;;  %v1746_v27 = vunpack.i.l.bf16 %v1745_v24 }
 0x185   :  { %1654 = vmatprep.subr.msk.bf16.mxu1 %vm2050_vm2, %v1652_v25  ;;  %v1648_v28 = vpack.c.bf16 %v1747_v26, %v1746_v27 }
 0x187   :  { %1649 = vmatprep.subr.bf16.mxu0 %v1648_v28 }
 0x188   :  { %1651 = vmatpush3.bf16.msra.mxu0 %v1648_v28 }
 0x189   :  { %1542 = vmatmul.mubr.msk.f32.vlgmr.msra.gmra.mrb[2].mxu1 %vm179_vm1, %v2032_v10 }
 0x18a   :  { %1657 = vmatpush3.bf16.xpose.msk.msra.mxu1 %vm2050_vm2, %v1652_v25  ;;  %1555 = vmatprep.mubr.msk.f32.mxu1 %vm179_vm1, %v381_v14 }
 0x191   :  { %1556 = vmatmul.mubr.msk.f32.vlgmr.msra.gmra.mrb[4].mxu1 %vm179_vm1, %v383_v18 }
 0x25c   :  { %v1543_v30 = vpop.f32.mrb[2].mxu1 }
 0x25d   :  { %v264_v31 = vmul.f32 0.35355338, %v1543_v30  ;;  %v254_v33 = vpop.f32.mrb[3].mxu1 }
 0x25e   :  { %v263_v34 = vmul.f32 0.35355338, %v254_v33 }
 0x25f   :  { %v266_v35 = vadd.f32 %v264_v31, %v2066_v29 }
 0x260   :  { %v265_v36 = vadd.f32 %v263_v34, %v2068_v32 }
 0x261   :  { %v269_v37 = vmul.f32 1.442695, %v266_v35 }
 0x262   :  { %v267_v38 = vmul.f32 1.442695, %v265_v36 }
 0x263   :  { %1773 = vpow2.f32 %v269_v37 }
 0x264   :  { %1775 = vpow2.f32 %v267_v38  ;;  %v1557_v39 = vpop.f32.mrb[4].mxu1 }
 0x265   :  { %v472_v40 = vmul.f32 0.35355338, %v1557_v39  ;;  %v462_v41 = vpop.f32.mrb[5].mxu1 }
 0x266   :  { %v471_v42 = vmul.f32 0.35355338, %v462_v41 }
 0x267   :  { %v474_v43 = vadd.f32 %v472_v40, %v2066_v29 }
 0x268   :  { %v473_v44 = vadd.f32 %v471_v42, %v2068_v32 }
 0x269   :  { %v477_v45 = vmul.f32 1.442695, %v474_v43 }
 0x26a   :  { %v475_v46 = vmul.f32 1.442695, %v473_v44 }
 0x26b   :  { %1777 = vpow2.f32 %v477_v45 }
 0x26c   :  { %1779 = vpow2.f32 %v475_v46 }
 0x26d   :  { %v1774_v47 = vpop.eup %1773 }
 0x26e   :  { %v1776_v48 = vpop.eup %1775  ;;  %v275_v49 = vsel %vm271_vm3, %v1774_v47, 0.0 }
 0x26f   :  { %276 = vadd.xlane.f32.xlu1 %v275_v49  ;;  %v272_v50 = vsel %vm271_vm3, %v1776_v48, 0.0 }
 0x270   :  { %273 = vadd.xlane.f32.xlu0 %v272_v50 }
 0x275   :  { %v1778_v51 = vpop.eup %1777 }
 0x276   :  { %v482_v52 = vsel %vm271_vm3, %v1778_v51, 0.0  ;;  %v1780_v53 = vpop.eup %1779 }
 0x277   :  { %483 = vadd.xlane.f32.xlu0 %v482_v52  ;;  %v479_v54 = vsel %vm271_vm3, %v1780_v53, 0.0 }
 0x27b   :  { %480 = vadd.xlane.f32.xlu0 %v479_v54 }
 0x280   :  { %1754 = vrot.lane.b32.xlu1 %v2041_v13, %s1893_s20 }
 0x284   :  { %596 = vrot.lane.b32.xlu1 %v2034_v12, %s1894_s21 }
 0x288   :  { %1764 = vrot.lane.b32.xlu1 %v2041_v13, %s1895_s0 }
 0x291   :  { %1749 = vrot.lane.b32.xlu0 %v2041_v13, %s1896_s30 }
 0x295   :  { %598 = vrot.lane.b32.xlu0 %v2032_v10, %s1894_s21 }
 0x2fc   :  { %v277_v55 = vpop.xlane.xlu1 %276 }
 0x2fd   :  { %1781 = vrcp.f32 %v277_v55  ;;  %v274_v56 = vpop.xlane.xlu0 %273 }
 0x2fe   :  { %1783 = vrcp.f32 %v274_v56 }
 0x300   :  { %v1755_v62 = vpop.permute.xlu1 %1754 }
 0x301   :  { %v1757_v1 = vunpack.i.h.bf16 %v1755_v62  ;;  %v1756_v2 = vunpack.i.l.bf16 %v1755_v62 }
 0x303   :  { %v1662_v8 = vpack.c.bf16 %v1757_v1, %v1756_v2 }
 0x304   :  { %v484_v57 = vpop.xlane.xlu0 %483  ;;  %v597_v16 = vpop.permute.xlu1 %596 }
 0x305   :  { %1785 = vrcp.f32 %v484_v57 }
 0x307   :  { %v1782_v58 = vpop.eup %1781 }
 0x308   :  { %v1784_v59 = vpop.eup %1783  ;;  %v481_v60 = vpop.xlane.xlu0 %480  ;;  %v2086_v63 = vmul.f32 %v1782_v58, %v1774_v47 }
 0x309   :  { %1787 = vrcp.f32 %v481_v60  ;;  %v2084_v61 = vmul.f32 %v1784_v59, %v1776_v48  ;;  %v1765_v37 = vpop.permute.xlu1 %1764 }
 0x30a   :  { %v1767_v41 = vunpack.i.h.bf16 %v1765_v37  ;;  %v1766_v42 = vunpack.i.l.bf16 %v1765_v37 }
 0x30b   :  { %1548 = vmatprep.mubr.msk.f32.mxu0 %vm271_vm3, %v2084_v61 }
 0x30c   :  { %1549 = vmatmul.mubr.msk.f32.vlgmr.msra.gmra.mrb[0].mxu0 %vm271_vm3, %v2086_v63  ;;  %v1750_v0 = vpop.permute.xlu0 %1749  ;;  %v1672_v46 = vpack.c.bf16 %v1767_v41, %v1766_v42 }
 0x30d   :  { %v1752_v3 = vunpack.i.h.bf16 %v1750_v0  ;;  %v1751_v4 = vunpack.i.l.bf16 %v1750_v0 }
 0x30f   :  { %v1658_v6 = vpack.c.bf16 %v1752_v3, %v1751_v4  ;;  %v1786_v9 = vpop.eup %1785 }
 0x310   :  { %v2096_v15 = vmul.f32 %v1786_v9, %v1778_v51  ;;  %v599_v17 = vpop.permute.xlu0 %598 }
 0x311   :  { %1659 = vmatprep.subr.bf16.mxu0 %v1658_v6 }
 0x312   :  { %1661 = vmatpush3.bf16.msra.mxu0 %v1658_v6 }
 0x313   :  { %v1788_v11 = vpop.eup %1787  ;;  %1664 = vmatprep.subr.msk.bf16.mxu0 %vm2050_vm2, %v1662_v8 }
 0x314   :  { %v2094_v14 = vmul.f32 %v1788_v11, %v1780_v53 }
 0x316   :  { %1562 = vmatprep.mubr.msk.f32.mxu0 %vm271_vm3, %v2094_v14 }
 0x317   :  { %1563 = vmatmul.mubr.msk.f32.vlgmr.msra.gmra.mrb[2].mxu0 %vm271_vm3, %v2096_v15 }
 0x318   :  { %1569 = vmatprep.mubr.msk.f32.mxu0 %vm179_vm1, %v597_v16 }
 0x31b   :  { %1667 = vmatpush3.bf16.xpose.msk.msra.mxu0 %vm2050_vm2, %v1662_v8 }
 0x322   :  { %1570 = vmatmul.mubr.msk.f32.vlgmr.msra.gmra.mrb[4].mxu0 %vm179_vm1, %v599_v17 }
 0x3df   :  { %v1550_v18 = vpop.f32.mrb[0].mxu0 }
 0x3e0   :  { %379 = vst.msk [vmem:[#allocation2 + $0x8] sm:$0xff] %vm179_vm1, %v1550_v18  ;;  %v369_v20 = vpop.f32.mrb[1].mxu0 }
 0x3e1   :  { %378 = vst.msk [vmem:[#allocation2] sm:$0xff] %vm179_vm1, %v369_v20 }
 0x3ea   :  { %v2108_v21 = vpop.f32.mrb[2].mxu0 }
 0x3eb   :  { %v2110_v22 = vpop.f32.mrb[3].mxu0 }
 0x3f5   :  { %v1571_v23 = vpop.f32.mrb[4].mxu0 }
 0x3f6   :  { %v688_v24 = vmul.f32 0.35355338, %v1571_v23  ;;  %v678_v25 = vpop.f32.mrb[5].mxu0  ;;  %v1032_v23 = vld [vmem:[%s2269_s4 + $0x10] sm:$0xff] }
 0x3f7   :  { %v687_v26 = vmul.f32 0.35355338, %v678_v25  ;;  %v1033_v25 = vld [vmem:[%s2269_s4 + $0x18] sm:$0xff] }
 0x3f8   :  { %v690_v27 = vadd.f32 %v688_v24, %v2066_v29 }
 0x3f9   :  { %v689_v28 = vadd.f32 %v687_v26, %v2068_v32  ;;  %v1686_v26 = vpack.c.bf16 %v1033_v25, %v1032_v23 }
 0x3fa   :  { %v693_v30 = vmul.f32 1.442695, %v690_v27 }
 0x3fb   :  { %v691_v31 = vmul.f32 1.442695, %v689_v28 }
 0x3fc   :  { %1789 = vpow2.f32 %v693_v30 }
 0x3fd   :  { %1791 = vpow2.f32 %v691_v31 }
 0x406   :  { %v1790_v33 = vpop.eup %1789 }
 0x407   :  { %v1792_v34 = vpop.eup %1791  ;;  %v698_v35 = vsel %vm271_vm3, %v1790_v33, 0.0 }
 0x408   :  { %699 = vadd.xlane.f32.xlu0 %v698_v35  ;;  %v695_v36 = vsel %vm271_vm3, %v1792_v34, 0.0  ;;  %v1453_v35 = vld [vmem:[%s2270_s5] ss:$0 sm:$0xff] }
 0x409   :  { %696 = vadd.xlane.f32.xlu1 %v695_v36 }
 0x41a   :  { %812 = vrot.lane.b32.xlu1 %v2034_v12, %s1897_s22 }
 0x41e   :  { %1759 = vrot.lane.b32.xlu0 %v2041_v13, %s1898_s25 }
 0x422   :  { %814 = vrot.lane.b32.xlu0 %v2032_v10, %s1897_s22 }
 0x495   :  { %v700_v38 = vpop.xlane.xlu0 %699 }
 0x496   :  { %1793 = vrcp.f32 %v700_v38  ;;  %v697_v39 = vpop.xlane.xlu1 %696 }
 0x497   :  { %1795 = vrcp.f32 %v697_v39 }
 0x499   :  { %v1760_v40 = vpop.permute.xlu0 %1759 }
 0x49a   :  { %v1762_v43 = vunpack.i.h.bf16 %v1760_v40  ;;  %v1761_v44 = vunpack.i.l.bf16 %v1760_v40  ;;  %v813_v49 = vpop.permute.xlu1 %812 }
 0x49c   :  { %v1668_v45 = vpack.c.bf16 %v1762_v43, %v1761_v44 }
 0x49d   :  { %v815_v50 = vpop.permute.xlu0 %814 }
 0x49e   :  { %1669 = vmatprep.subr.bf16.mxu1 %v1668_v45 }
 0x49f   :  { %1671 = vmatpush3.bf16.msra.mxu1 %v1668_v45 }
 0x4a0   :  { %v1794_v12 = vpop.eup %1793  ;;  %1674 = vmatprep.subr.msk.bf16.mxu1 %vm2050_vm2, %v1672_v46 }
 0x4a1   :  { %v1796_v47 = vpop.eup %1795  ;;  %v2124_v48 = vmul.f32 %v1794_v12, %v1790_v33 }
 0x4a2   :  { %v2122_v10 = vmul.f32 %v1796_v47, %v1792_v34 }
 0x4a4   :  { %1576 = vmatprep.mubr.msk.f32.mxu1 %vm271_vm3, %v2122_v10 }
 0x4a5   :  { %1577 = vmatmul.mubr.msk.f32.vlgmr.msra.gmra.mrb[6].mxu1 %vm271_vm3, %v2124_v48 }
 0x4a6   :  { %1583 = vmatprep.mubr.msk.f32.mxu1 %vm179_vm1, %v813_v49 }
 0x4a8   :  { %1677 = vmatpush3.bf16.xpose.msk.msra.mxu1 %vm2050_vm2, %v1672_v46 }
 0x4af   :  { %1584 = vmatmul.mubr.msk.f32.vlgmr.msra.gmra.mrb[8].mxu1 %vm179_vm1, %v815_v50 }
 0x578   :  { %v1578_v51 = vpop.f32.mrb[6].mxu1 }
 0x579   :  { %v792_v52 = vpop.f32.mrb[7].mxu1 }
 0x582   :  { %v1585_v53 = vpop.f32.mrb[8].mxu1 }
 0x583   :  { %v904_v54 = vmul.f32 0.35355338, %v1585_v53  ;;  %v894_v55 = vpop.f32.mrb[9].mxu1  ;;  %v1170_v53 = vld [vmem:[%s2273_s8 + $0x8] sm:$0xff] }
 0x584   :  { %v903_v56 = vmul.f32 0.35355338, %v894_v55  ;;  %v1171_v55 = vld [vmem:[%s2273_s8 + $0x10] sm:$0xff] }
 0x585   :  { %v906_v57 = vadd.f32 %v904_v54, %v2066_v29 }
 0x586   :  { %v905_v58 = vadd.f32 %v903_v56, %v2068_v32  ;;  %v1172_v56 = vld [vmem:[%s2273_s8 + $0x18] sm:$0xff] }
 0x587   :  { %v909_v59 = vmul.f32 1.442695, %v906_v57  ;;  %v1694_v57 = vpack.c.bf16 %v1172_v56, %v1171_v55 }
 0x588   :  { %v907_v60 = vmul.f32 1.442695, %v905_v58  ;;  %v1263_v58 = vld [vmem:[%s2275_s10] sm:$0xff] }
 0x589   :  { %1797 = vpow2.f32 %v909_v59  ;;  %v1264_v59 = vld [vmem:[%s2275_s10 + $0x8] sm:$0xff] }
 0x58a   :  { %1799 = vpow2.f32 %v907_v60  ;;  %v1265_v60 = vld [vmem:[%s2275_s10 + $0x10] sm:$0xff] }
 0x593   :  { %v1798_v62 = vpop.eup %1797 }
 0x594   :  { %v1800_v19 = vpop.eup %1799  ;;  %v914_v0 = vsel %vm271_vm3, %v1798_v62, 0.0 }
 0x595   :  { %915 = vadd.xlane.f32.xlu0 %v914_v0  ;;  %v911_v1 = vsel %vm271_vm3, %v1800_v19, 0.0 }
 0x596   :  { %912 = vadd.xlane.f32.xlu1 %v911_v1  ;;  %v1267_v1 = vld [vmem:[%s2275_s10 + $0x20] sm:$0xff] }
 0x5a7   :  { %587 = vrot.lane.b32.xlu1 %v2110_v22, %s1887_s24  ;;  %v1031_v22 = vld [vmem:[%s2269_s4 + $0x8] sm:$0xff] }
 0x5ab   :  { %1769 = vrot.lane.b32.xlu0 %v2041_v13, %s1899_s26  ;;  %589 = vrot.lane.b32.xlu1 %v2108_v21, %s1887_s24  ;;  %v1030_v21 = vld [vmem:[%s2269_s4] sm:$0xff] }
 0x5ac   :  { %v1682_v24 = vpack.c.bf16 %v1031_v22, %v1030_v21 }
 0x5af   :  { %803 = vrot.lane.b32.xlu0 %v792_v52, %s1900_s27  ;;  %805 = vrot.lane.b32.xlu1 %v1578_v51, %s1900_s27 }
 0x622   :  { %v916_v29 = vpop.xlane.xlu0 %915 }
 0x623   :  { %1801 = vrcp.f32 %v916_v29  ;;  %v913_v32 = vpop.xlane.xlu1 %912  ;;  %v1268_v29 = vld [vmem:[%s2275_s10 + $0x28] sm:$0xff] }
 0x624   :  { %1803 = vrcp.f32 %v913_v32  ;;  %v1706_v32 = vpack.c.bf16 %v1268_v29, %v1267_v1 }
 0x626   :  { %v1770_v2 = vpop.permute.xlu0 %1769 }
 0x627   :  { %v1772_v3 = vunpack.i.h.bf16 %v1770_v2  ;;  %v1771_v4 = vunpack.i.l.bf16 %v1770_v2  ;;  %v588_v6 = vpop.permute.xlu1 %587 }
 0x628   :  { %594 = vst.msk [vmem:[#allocation2] sm:$0xff] %vm593_vm4, %v588_v6 }
 0x629   :  { %v1678_v8 = vpack.c.bf16 %v1772_v3, %v1771_v4 }
 0x62a   :  { %v804_v9 = vpop.permute.xlu0 %803 }
 0x62b   :  { %810 = vst.msk [vmem:[#allocation2] sm:$0xff] %vm809_vm5, %v804_v9  ;;  %1679 = vmatprep.subr.bf16.mxu0 %v1678_v8  ;;  %v590_v13 = vpop.permute.xlu1 %589 }
 0x62c   :  { %595 = vst.msk [vmem:[#allocation2 + $0x8] sm:$0xff] %vm593_vm4, %v590_v13  ;;  %1681 = vmatpush3.bf16.msra.mxu0 %v1678_v8 }
 0x62d   :  { %v1802_v11 = vpop.eup %1801  ;;  %1683 = vmatprep.subr.bf16.mxu0 %v1682_v24 }
 0x62e   :  { %v1804_v16 = vpop.eup %1803  ;;  %v2145_v20 = vmul.f32 %v1802_v11, %v1798_v62  ;;  %v1698_v62 = vpack.c.bf16 %v1264_v59, %v1263_v58  ;;  %v1456_v11 = vld [vmem:[%s2271_s6] ss:$0 sm:$0xff] }
 0x62f   :  { %v806_v17 = vpop.permute.xlu1 %805  ;;  %v2143_v18 = vmul.f32 %v1804_v16, %v1800_v19  ;;  %v1266_v19 = vld [vmem:[%s2275_s10 + $0x18] sm:$0xff] }
 0x630   :  { %811 = vst.msk [vmem:[#allocation2 + $0x8] sm:$0xff] %vm809_vm5, %v806_v17  ;;  %v1702_v0 = vpack.c.bf16 %v1266_v19, %v1265_v60  ;;  %v1457_v17 = vld [vmem:[%s2272_s7] ss:$0 sm:$0xff] }
 0x631   :  { %1590 = vmatprep.mubr.msk.f32.mxu0 %vm271_vm3, %v2143_v18 }
 0x632   :  { %1591 = vmatmul.mubr.msk.f32.vlgmr.msra.gmra.mrb[6].mxu0 %vm271_vm3, %v2145_v20 }
 0x633   :  { %1685 = vmatpush3.bf16.msra.mxu0 %v1682_v24 }
 0x634   :  { %1687 = vmatprep.subr.bf16.mxu0 %v1686_v26 }
 0x637   :  { %1689 = vmatpush3.bf16.msra.mxu0 %v1686_v26 }
 0x638   :  { %1699 = vmatprep.subr.bf16.mxu0 %v1698_v62 }
 0x705   :  { %v1592_v27 = vpop.f32.mrb[6].mxu0 }
 0x706   :  { %1021 = vrot.lane.b32.xlu1 %v1592_v27, %s1901_s3  ;;  %v1008_v28 = vpop.f32.mrb[7].mxu0  ;;  %v1269_v27 = vld [vmem:[%s2275_s10 + $0x30] sm:$0xff] }
 0x707   :  { %1019 = vrot.lane.b32.xlu0 %v1008_v28, %s1901_s3  ;;  %v1270_v28 = vld [vmem:[%s2275_s10 + $0x38] sm:$0xff] }
 0x778   :  { %v1022_v30 = vpop.permute.xlu1 %1021 }
 0x779   :  { %1027 = vst.msk [vmem:[#allocation2 + $0x8] sm:$0xff] %vm1025_vm6, %v1022_v30  ;;  %v1020_v31 = vpop.permute.xlu0 %1019  ;;  %v1710_v30 = vpack.c.bf16 %v1270_v28, %v1269_v27 }
 0x77a   :  { %1026 = vst.msk [vmem:[#allocation2] sm:$0xff] %vm1025_vm6, %v1020_v31  ;;  %v1458_v31 = vld [vmem:[%s2274_s9] ss:$0 sm:$0xff]  ;;  %s1902_s9 = smov 32  }
 0x780   :  { %v1029_v34 = vld [vmem:[#allocation2 + $0x8] sm:$0xff] }
 0x781   :  { %v1028_v33 = vld [vmem:[#allocation2] sm:$0xff] }
 0x782   :  { %1601 = vmatprep.mubr.msk.f32.mxu0 %vm91_vm0, %v1028_v33 }
 0x783   :  { %1602 = vmatmul.mubr.msk.f32.vlgmr.msra.gmra.mrb[8].mxu0 %vm91_vm0, %v1029_v34 }
 0x784   :  { %1701 = vmatpush3.bf16.msra.mxu0 %v1698_v62 }
 0x785   :  { %1703 = vmatprep.subr.bf16.mxu0 %v1702_v0 }
 0x788   :  { %1705 = vmatpush3.bf16.msra.mxu0 %v1702_v0 }
 0x789   :  { %1707 = vmatprep.subr.bf16.mxu0 %v1706_v32 }
 0x78c   :  { %1709 = vmatpush3.bf16.msra.mxu0 %v1706_v32 }
 0x78d   :  { %1711 = vmatprep.subr.bf16.mxu0 %v1710_v30 }
 0x790   :  { %1713 = vmatpush3.bf16.msra.mxu0 %v1710_v30 }
 0x856   :  { %v1603_v36 = vpop.f32.mrb[8].mxu0 }
 0x857   :  { %v1119_v37 = vadd.f32 %v1603_v36, %v1453_v35  ;;  %v1113_v38 = vpop.f32.mrb[9].mxu0 }
 0x858   :  { %v1114_v39 = vadd.f32 %v1453_v35, %v1113_v38 }
 0x859   :  { %v1123_v40 = vadd.f32 %v1119_v37, %v2025_v7 }
 0x85a   :  { %v1122_v41 = vadd.f32 %v1114_v39, %v2021_v5  ;;  %v1169_v5 = vld [vmem:[%s2273_s8] sm:$0xff] }
 0x85b   :  { %v1129_v42 = vsel %vm91_vm0, %v1123_v40, 0.0  ;;  %v1690_v54 = vpack.c.bf16 %v1170_v53, %v1169_v5  ;;  %v1461_v39 = vld [vmem:[%s2276_s11] ss:$0 sm:$0xff] }
 0x85c   :  { %1130 = vadd.xlane.f32.xlu1 %v1129_v42  ;;  %v1126_v43 = vsel %vm91_vm0, %v1122_v41, 0.0 }
 0x85d   :  { %1127 = vadd.xlane.f32.xlu0 %v1126_v43  ;;  %1691 = vmatprep.subr.bf16.mxu1 %v1690_v54 }
 0x85e   :  { %1693 = vmatpush3.bf16.msra.mxu1 %v1690_v54 }
 0x85f   :  { %1695 = vmatprep.subr.bf16.mxu1 %v1694_v57 }
 0x862   :  { %1697 = vmatpush3.bf16.msra.mxu1 %v1694_v57 }
 0x8e9   :  { %v1131_v44 = vpop.xlane.xlu1 %1130 }
 0x8ea   :  { %v1134_v45 = vmul.f32 0.03125, %v1131_v44  ;;  %v1128_v46 = vpop.xlane.xlu0 %1127 }
 0x8eb   :  { %v1133_v12 = vmul.f32 0.03125, %v1128_v46 }
 0x8ec   :  { %v1136_v47 = vsub.f32 %v1123_v40, %v1134_v45 }
 0x8ed   :  { %v1135_v49 = vsub.f32 %v1122_v41, %v1133_v12 }
 0x8ee   :  { %v1138_v52 = vmul.f32 %v1136_v47, %v1136_v47 }
 0x8ef   :  { %v1137_v50 = vmul.f32 %v1135_v49, %v1135_v49 }
 0x8f0   :  { %v1142_v7 = vsel %vm91_vm0, %v1138_v52, 0.0 }
 0x8f1   :  { %v1139_v51 = vsel %vm91_vm0, %v1137_v50, 0.0 }
 0x8f2   :  { %1140 = vadd.xlane.f32.xlu0 %v1139_v51 }
 0x8f6   :  { %1143 = vadd.xlane.f32.xlu0 %v1142_v7 }
 0x97f   :  { %v1141_v2 = vpop.xlane.xlu0 %1140 }
 0x980   :  { %v1145_v3 = vmul.f32 0.03125, %v1141_v2  ;;  %v1465_v2 = vld [vmem:[%s2278_s13] ss:$0 sm:$0xff] }
 0x982   :  { %v1147_v4 = vadd.f32 1e-05, %v1145_v3 }
 0x983   :  { %v1144_v6 = vpop.xlane.xlu0 %1143 }
 0x984   :  { %1805 = vrsqrt.f32 %v1147_v4  ;;  %v1146_v8 = vmul.f32 0.03125, %v1144_v6 }
 0x986   :  { %v1148_v9 = vadd.f32 1e-05, %v1146_v8 }
 0x988   :  { %1807 = vrsqrt.f32 %v1148_v9 }
 0x98e   :  { %v1806_v13 = vpop.eup %1805 }
 0x98f   :  { %v1151_v16 = vmul.f32 %v1806_v13, %v1135_v49 }
 0x991   :  { %v1159_v21 = vmul.f32 %v1456_v11, %v1151_v16 }
 0x992   :  { %v1808_v22 = vpop.eup %1807 }
 0x993   :  { %v1152_v23 = vmul.f32 %v1808_v22, %v1136_v47  ;;  %v1167_v24 = vadd.f32 %v1457_v17, %v1159_v21 }
 0x995   :  { %v1160_v25 = vmul.f32 %v1456_v11, %v1152_v23  ;;  %1612 = vmatprep.mubr.msk.f32.mxu1 %vm91_vm0, %v1167_v24 }
 0x997   :  { %v1168_v26 = vadd.f32 %v1457_v17, %v1160_v25 }
 0x999   :  { %1613 = vmatmul.mubr.msk.f32.vlgmr.msra.gmra.mrb[10].mxu1 %vm91_vm0, %v1168_v26 }
 0xa6c   :  { %v1614_v33 = vpop.f32.mrb[10].mxu1 }
 0xa6d   :  { %v1258_v34 = vadd.f32 %v1614_v33, %v1458_v31  ;;  %v1252_v35 = vpop.f32.mrb[11].mxu1 }
 0xa6e   :  { %v1253_v36 = vadd.f32 %v1458_v31, %v1252_v35 }
 0xa6f   :  { %v1262_v38 = vmax.f32 %v1258_v34, 0.0 }
 0xa70   :  { %v1261_v37 = vmax.f32 %v1253_v36, 0.0 }
 0xa72   :  { %1631 = vmatprep.mubr.msk.f32.mxu0 %vm1278_vm7, %v1261_v37 }
 0xa73   :  { %1632 = vmatmul.mubr.msk.f32.vlgmr.msra.gmra.mrb[10].mxu0 %vm1278_vm7, %v1262_v38 }
 0xb46   :  { %v1633_v40 = vpop.f32.mrb[10].mxu0 }
 0xb47   :  { %v1357_v41 = vadd.f32 %v1633_v40, %v1461_v39  ;;  %v1351_v42 = vpop.f32.mrb[11].mxu0 }
 0xb48   :  { %v1352_v43 = vadd.f32 %v1461_v39, %v1351_v42 }
 0xb49   :  { %v1361_v44 = vadd.f32 %v1357_v41, %v1168_v26 }
 0xb4a   :  { %v1360_v45 = vadd.f32 %v1352_v43, %v1167_v24 }
 0xb4b   :  { %v1367_v46 = vsel %vm91_vm0, %v1361_v44, 0.0 }
 0xb4c   :  { %1368 = vadd.xlane.f32.xlu0 %v1367_v46  ;;  %v1364_v12 = vsel %vm91_vm0, %v1360_v45, 0.0 }
 0xb4d   :  { %1365 = vadd.xlane.f32.xlu1 %v1364_v12 }
 0xb5e   :  { %284 = vrot.lane.b32.xlu1 %v2084_v61, %s1902_s9 }
 0xb62   :  { %286 = vrot.lane.b32.xlu0 %v2086_v63, %s1902_s9  ;;  %491 = vrot.lane.b32.xlu1 %v2094_v14, %s1898_s25 }
 0xb66   :  { %493 = vrot.lane.b32.xlu1 %v2096_v15, %s1898_s25  ;;  %s1903_s25 = smov [#allocation8]  }
 0xb67   :  { %s1413_s2 = sshll.u32 %s1903_s25, 4  ;;  %s1414_s2 = int_to_ptr.vmem [resolvable:$true] %s1413_s2 }
 0xb68   :  { %s1857_s18 = scalar_lea.vmem %s1414_s2, 256  ;;  %p1862_p3 = scmp.lt.s32.totalorder %s1414_s2, %s1414_s2 }
 0xb69   :  { %p1858_p2 = scmp.ne.s32.totalorder %s1414_s2, %s1857_s18  ;;  %p1863_p4 = scmp.lt.s32.totalorder %s1857_s18, %s1857_s18 }
 0xb6a   :  { %709 = vrot.lane.b32.xlu1 %v2124_v48, %s1892_s19 }
 0xb6b   :  { %p1864_p5 = por %p1863_p4, %p1862_p3 }
 0xb6d   :  { %p1865_p6 = pnand %p1864_p5, %p1858_p2 }
 0xbd9   :  { %v1369_v47 = vpop.xlane.xlu0 %1368 }
 0xbda   :  { %v1371_v49 = vmul.f32 0.03125, %v1369_v47  ;;  %v1366_v50 = vpop.xlane.xlu1 %1365 }
 0xbdb   :  { %v1370_v51 = vmul.f32 0.03125, %v1366_v50 }
 0xbdc   :  { %v1373_v52 = vsub.f32 %v1361_v44, %v1371_v49 }
 0xbdd   :  { %v1372_v7 = vsub.f32 %v1360_v45, %v1370_v51  ;;  %v287_v5 = vpop.permute.xlu0 %286 }
 0xbde   :  { %292 = vst.msk [vmem:[#allocation8 + $0x8] sm:$0xff] %vm290_vm8, %v287_v5  ;;  %v285_v61 = vpop.permute.xlu1 %284  ;;  %v1375_v63 = vmul.f32 %v1373_v52, %v1373_v52 }
 0xbdf   :  { %291 = vst.msk [vmem:[#allocation8] sm:$0xff] %vm290_vm8, %v285_v61  ;;  %v1374_v53 = vmul.f32 %v1372_v7, %v1372_v7 }
 0xbe0   :  { %v1379_v14 = vsel %vm91_vm0, %v1375_v63, 0.0 }
 0xbe1   :  { %1380 = vadd.xlane.f32.xlu0 %v1379_v14  ;;  %v1376_v15 = vsel %vm91_vm0, %v1374_v53, 0.0 }
 0xbe2   :  { %1377 = vadd.xlane.f32.xlu1 %v1376_v15  ;;  %v492_v48 = vpop.permute.xlu1 %491 }
 0xbe3   :  { %498 = vst.msk [vmem:[#allocation8] sm:$0xff] %vm497_vm9, %v492_v48 }
 0xbe6   :  { %v494_v54 = vpop.permute.xlu1 %493 }
 0xbe7   :  { %499 = vst.msk [vmem:[#allocation8 + $0x8] sm:$0xff] %vm497_vm9, %v494_v54 }
 0xbea   :  { %v710_v55 = vpop.permute.xlu1 %709 }
 0xbeb   :  { %715 = vst.msk [vmem:[#allocation8 + $0x8] sm:$0xff] %vm713_vm10, %v710_v55 }
 0xbf3   :  { %925 = vrot.lane.b32.xlu1 %v2145_v20, %s1893_s20 }
 0xbf7   :  { %707 = vrot.lane.b32.xlu0 %v2122_v10, %s1892_s19  ;;  %v1464_v10 = vld [vmem:[%s2277_s12] ss:$0 sm:$0xff] }
 0xbfb   :  { %923 = vrot.lane.b32.xlu0 %v2143_v18, %s1893_s20 }
 0xc6e   :  { %v1381_v56 = vpop.xlane.xlu0 %1380 }
 0xc6f   :  { %v1383_v57 = vmul.f32 0.03125, %v1381_v56  ;;  %v1378_v58 = vpop.xlane.xlu1 %1377 }
 0xc70   :  { %v1382_v59 = vmul.f32 0.03125, %v1378_v58 }
 0xc71   :  { %v1385_v60 = vadd.f32 1e-05, %v1383_v57 }
 0xc72   :  { %v1384_v62 = vadd.f32 1e-05, %v1382_v59  ;;  %v708_v19 = vpop.permute.xlu0 %707 }
 0xc73   :  { %1809 = vrsqrt.f32 %v1385_v60  ;;  %714 = vst.msk [vmem:[#allocation8] sm:$0xff] %vm713_vm10, %v708_v19  ;;  %v926_v0 = vpop.permute.xlu1 %925 }
 0xc74   :  { %1811 = vrsqrt.f32 %v1384_v62  ;;  %931 = vst.msk [vmem:[#allocation8 + $0x8] sm:$0xff] %vm929_vm11, %v926_v0 }
 0xc76   :  { %v924_v20 = vpop.permute.xlu0 %923 }
 0xc77   :  { %930 = vst.msk [vmem:[#allocation8] sm:$0xff] %vm929_vm11, %v924_v20 }
 0xc7d   :  { %v1810_v1 = vpop.eup %1809 }
 0xc7e   :  { %v1812_v18 = vpop.eup %1811  ;;  %v1389_v29 = vmul.f32 %v1810_v1, %v1373_v52 }
 0xc7f   :  { %v1388_v32 = vmul.f32 %v1812_v18, %v1372_v7 }
 0xc80   :  { %v1397_v3 = vmul.f32 %v1464_v10, %v1389_v29 }
 0xc81   :  { %v1396_v4 = vmul.f32 %v1464_v10, %v1388_v32 }
 0xc82   :  { %v1405_v6 = vadd.f32 %v1465_v2, %v1397_v3 }
 0xc83   :  { %v1404_v8 = vadd.f32 %v1465_v2, %v1396_v4 }
 0xc84   :  { %1407 = vst.msk [vmem:[#allocation8 + $0x8] sm:$0xff] %vm91_vm0, %v1405_v6 }
 0xc85   :  { %1406 = vst.msk [vmem:[#allocation8] sm:$0xff] %vm91_vm0, %v1404_v8 }
 0xc86   :  { %1868 = shalt.err (!%p1865_p6)
}
 0xc87   :  { %s1869_s3 = scalar_lea.hbm %s2279_s14, 256 }
 0xc88   :  { %p1870_p7 = scmp.ne.s32.totalorder %s2279_s14, %s1869_s3  ;;  %p1873_p8 = scmp.lt.u32.totalorder %s1869_s3, %s2279_s14 }
 0xc8a   :  { %p1875_p9 = pnand %p1873_p8, %p1870_p7 }
 0xc8c   :  { %1878 = shalt.err (!%p1875_p9)
}
 0xc8d   :  { %1419 = dma.vmem_to_hbm [thread:$0]  %s1414_s2, 256, %s2279_s14, [#allocation5], %s1886_s23, %s1886_s23, %s1887_s24  }
 0xc8e   :  { %1883 = dma.done.wait [#allocation5], 256  }
 0xc8f   :  { %1884 = vsyncadd [#allocation5], 4294967040 }
 0xc90   :  { %1423 = vsyncpa [#allocation4], 1 }
 0xc91   :  { %1424 = vsyncpa [#allocation7], 1 }
 0xc92   :  { %1425 = vsyncpa [#allocation5], 1 }

</bundles_post_ra>
